<compile_context>
chip_gen: v6e
topology: v6e:2x2x1
jax: 0.10.0
libtpu: 0.0.40
codegen_flags: <defaults>
</compile_context>

<pallas_src>
import functools

import jax
import jax.numpy as jnp
from jax import lax
from jax.experimental import pallas as pl
from jax.experimental.pallas import tpu as pltpu

BN_EPS = 1e-5


def _round_up(x, m):
    return (x + m - 1) // m * m


def _gen_params():
    """Generation-aware VMEM limit and path thresholds.

    v5e / v6e: 128 MiB physical VMEM -> large limit, fused path kept longer.
    v7x:       64 MiB per TensorCore -> conservative limit, smaller tiles.
    """
    phys = 128 << 20
    try:
        info = pltpu.get_tpu_info()
        for attr in ("vmem_capacity_bytes", "vmem_size_bytes", "vmem_bytes"):
            v = getattr(info, attr, None)
            if v:
                phys = int(v)
                break
    except Exception:
        pass
    if phys <= (96 << 20):        # v7x-class (64 MiB / TC)
        return dict(vmem_limit=48 << 20, fused_budget=16 << 20, tile_cap=1024)
    # v5e / v6e (128 MiB).  fused_budget kept below the "exposed DMA" regime:
    # the fused path has no grid, so its input DMAs are not pipelined.
    return dict(vmem_limit=96 << 20, fused_budget=48 << 20, tile_cap=2048)


# --------------------------------------------------------------------------
# Path A: whole problem in one VMEM block (small N * O).  Fused matmul + BN.
# --------------------------------------------------------------------------
def _fused_kernel(x_ref, wt_ref, gb_ref, o_ref, *, n_valid):
    x = x_ref[...].astype(wt_ref.dtype)          # cast x tile to MXU dtype
    # Linear WITHOUT the nn.Linear bias: the batch-mean subtraction below
    # cancels it exactly (zero numerical change).  wT is (I, Opad) -> the
    # canonical (K, N) MXU feed path, no relayout.
    y = jnp.dot(x, wt_ref[...], preferred_element_type=jnp.float32)  # (Np, Opad) f32

    inv_n = jnp.float32(1.0 / n_valid)
    # Zero-padded batch rows (no bias) contribute exactly 0 to the sum.
    mean = jnp.sum(y, axis=0, keepdims=True) * inv_n                 # (1, Opad)
    if y.shape[0] == n_valid:
        centered = y - mean
    else:
        rows = lax.broadcasted_iota(jnp.int32, (y.shape[0], 1), 0)
        centered = (y - mean) * (rows < n_valid).astype(jnp.float32)
    # Numerically stable two-pass (biased) variance, as in PyTorch training BN.
    var = jnp.sum(centered * centered, axis=0, keepdims=True) * inv_n
    inv_std = lax.rsqrt(var + jnp.float32(BN_EPS))

    # BN affine folded into one scale/shift FMA on the (Np, Opad) tile.
    scale = gb_ref[0:1, :] * inv_std
    shift = gb_ref[1:2, :] - mean * scale
    o_ref[...] = (y * scale + shift).astype(o_ref.dtype)


# --------------------------------------------------------------------------
# Path B (large N): pass 1 = batch-parallel matmul + per-tile partial stats,
#                   pass 2 = scale/shift FMA.  Both grids are "parallel",
#                   so both v7x TensorCores are busy in both passes.
# --------------------------------------------------------------------------
def _matmul_stats_kernel(x_ref, wt_ref, y_ref, stats_ref):
    x = x_ref[...].astype(wt_ref.dtype)          # (tn, I) -> MXU dtype
    y = jnp.dot(x, wt_ref[...], preferred_element_type=jnp.float32)  # (tn, Opad) f32
    y_ref[...] = y.astype(y_ref.dtype)           # bf16 intermediate by default
    # Per-tile partial sum / sum-of-squares (f32, from the f32 accumulator).
    s = jnp.sum(y, axis=0, keepdims=True)
    ss = jnp.sum(y * y, axis=0, keepdims=True)
    stats_ref[...] = jnp.concatenate([s, ss], axis=0).reshape(stats_ref.shape)


def _bn_apply_kernel(y_ref, sc_ref, o_ref):
    y = y_ref[...].astype(jnp.float32)
    o_ref[...] = (y * sc_ref[0:1, :] + sc_ref[1:2, :]).astype(o_ref.dtype)


# --------------------------------------------------------------------------
# Wrapper
# --------------------------------------------------------------------------
def fc1_pub_bn_forward(x, weight, bias, gamma0, beta0, gamma1, beta1, ind=0,
                       *, mxu_dtype=jnp.bfloat16, tile_n=None, tiled=None):
    """Forward of fc1_pub_bn: BatchNorm1d_{ind}(Linear(x)), training-mode BN.

    x: (N, I).  weight: (O, I).  bias is accepted for API parity with
    nn.Linear but is mathematically cancelled by the batch-mean subtraction,
    so it is never read.
    """
    del bias
    N, I = x.shape
    O, I2 = weight.shape
    assert I2 == I

    # Python-level branch, mirroring the module's `if ind == 0:`.
    gamma = (gamma0 if ind == 0 else gamma1).astype(jnp.float32)
    beta = (beta0 if ind == 0 else beta1).astype(jnp.float32)

    gen = _gen_params()
    vmem_limit = gen["vmem_limit"]

    mxu_bytes = jnp.dtype(mxu_dtype).itemsize
    x_bytes = x.dtype.itemsize
    out_bytes = x.dtype.itemsize

    # Lane-dense feature axis (unmasked vector stores); weight pre-transposed
    # to (I, Opad) and pre-cast ONCE to the MXU dtype (no per-step recast).
    Opad = _round_up(O, 128)
    wT = weight.T
    if Opad != O:
        wT = jnp.pad(wT, ((0, 0), (0, Opad - O)))
        gamma = jnp.pad(gamma, (0, Opad - O))
        beta = jnp.pad(beta, (0, Opad - O))
    wT = wT.astype(mxu_dtype)

    if tiled is None:
        Np8 = _round_up(N, 8)
        est = (Np8 * I * x_bytes + Opad * I * mxu_bytes
               + Np8 * Opad * (4 + out_bytes) + 2 * Opad * 4)
        tiled = est > gen["fused_budget"]

    if not tiled:
        # ---- Path A: single fused block (no grid) ----
        Np = _round_up(N, 8)
        x_p = jnp.pad(x, ((0, Np - N), (0, 0))) if Np != N else x
        gb = jnp.stack([gamma, beta], axis=0)            # packed (2, Opad)
        out = pl.pallas_call(
            functools.partial(_fused_kernel, n_valid=N),
            out_shape=jax.ShapeDtypeStruct((Np, Opad), x.dtype),
            in_specs=[
                pl.BlockSpec((Np, I), lambda: (0, 0)),
                pl.BlockSpec((I, Opad), lambda: (0, 0)),
                pl.BlockSpec((2, Opad), lambda: (0, 0)),
            ],
            out_specs=pl.BlockSpec((Np, Opad), lambda: (0, 0)),
            compiler_params=pltpu.CompilerParams(vmem_limit_bytes=vmem_limit),
            cost_estimate=pl.CostEstimate(
                flops=2 * Np * I * Opad,
                transcendentals=0,
                bytes_accessed=(Np * I * x_bytes + I * Opad * mxu_bytes
                                + 2 * Opad * 4 + Np * Opad * out_bytes)),
        )(x_p, wT, gb)
        if Np == N and Opad == O:
            return out
        return out[:N, :O]

    # ---- Path B: megacore-parallel two-pass ----
    if tile_n is None:
        # Per-step footprint: double-buffered x tile + double-buffered y tile
        # (pass 1) or y + out tiles (pass 2), plus the (currently
        # double-buffered) resident weight.
        budget = int(vmem_limit * 0.8)
        fixed = 2 * Opad * I * mxu_bytes
        per_row = max(2 * I * x_bytes + 2 * Opad * mxu_bytes,
                      2 * Opad * mxu_bytes + 2 * Opad * out_bytes)
        tn = (budget - fixed) // max(per_row, 1)
        tn = min(int(tn), gen["tile_cap"], _round_up(N, 8))
        tn = max(8, (tn // 8) * 8)
    else:
        tn = max(8, (_round_up(min(tile_n, _round_up(N, 8)), 8)))

    Np = _round_up(N, tn)
    x_p = jnp.pad(x, ((0, Np - N), (0, 0))) if Np != N else x
    T = Np // tn
    y_dtype = mxu_dtype          # bf16 intermediate (default) halves y traffic
    y_bytes = jnp.dtype(y_dtype).itemsize

    # Pass 1: y = x @ wT per batch tile + per-tile partial sum/sumsq written to
    # a "parallel"-indexed (T, 2, Opad) output -> splits across v7x TCs.
    y_p, partials = pl.pallas_call(
        _matmul_stats_kernel,
        grid=(T,),
        out_shape=(jax.ShapeDtypeStruct((Np, Opad), y_dtype),
                   jax.ShapeDtypeStruct((T, 2, Opad), jnp.float32)),
        in_specs=[
            pl.BlockSpec((tn, I), lambda i: (i, 0)),
            pl.BlockSpec((I, Opad), lambda i: (0, 0)),   # weight stays resident
        ],
        out_specs=(
            pl.BlockSpec((tn, Opad), lambda i: (i, 0)),
            pl.BlockSpec((1, 2, Opad), lambda i: (i, 0, 0)),
        ),
        compiler_params=pltpu.CompilerParams(
            dimension_semantics=("parallel",),
            vmem_limit_bytes=vmem_limit),
        cost_estimate=pl.CostEstimate(
            flops=2 * Np * I * Opad,
            transcendentals=0,
            bytes_accessed=(Np * I * x_bytes + I * Opad * mxu_bytes
                            + Np * Opad * y_bytes + T * 2 * Opad * 4)),
    )(x_p, wT)

    # Combine tiny per-tile partials and fold BN into one scale/shift (XLA).
    # Zero-padded batch rows contribute exactly 0 to both partial sums.
    stats = jnp.sum(partials, axis=0)                    # (2, Opad) f32
    inv_n = jnp.float32(1.0 / N)
    mean = stats[0] * inv_n
    var = jnp.maximum(stats[1] * inv_n - mean * mean, 0.0)
    inv_std = lax.rsqrt(var + jnp.float32(BN_EPS))
    scale = gamma * inv_std
    shift = beta - mean * scale
    sc_sh = jnp.stack([scale, shift], axis=0)            # (2, Opad) f32

    # Pass 2: out = y*scale + shift, written directly in x.dtype, "parallel".
    out = pl.pallas_call(
        _bn_apply_kernel,
        grid=(T,),
        out_shape=jax.ShapeDtypeStruct((Np, Opad), x.dtype),
        in_specs=[
            pl.BlockSpec((tn, Opad), lambda i: (i, 0)),
            pl.BlockSpec((2, Opad), lambda i: (0, 0)),
        ],
        out_specs=pl.BlockSpec((tn, Opad), lambda i: (i, 0)),
        compiler_params=pltpu.CompilerParams(
            dimension_semantics=("parallel",),
            vmem_limit_bytes=vmem_limit),
        cost_estimate=pl.CostEstimate(
            flops=2 * Np * Opad,
            transcendentals=0,
            bytes_accessed=(Np * Opad * (y_bytes + out_bytes) + 2 * Opad * 4)),
    )(y_p, sc_sh)

    if Np == N and Opad == O:
        return out
    return out[:N, :O]


# --------------------------------------------------------------------------
# Reference (full nn.Linear incl. bias + training-mode BN, all f32)
# --------------------------------------------------------------------------
def _reference(x, weight, bias, gamma, beta):
    y = x @ weight.T + bias
    mean = jnp.mean(y, axis=0, keepdims=True)
    var = jnp.mean((y - mean) ** 2, axis=0, keepdims=True)
    return (y - mean) / jnp.sqrt(var + BN_EPS) * gamma + beta


if __name__ == "__main__":
    key = jax.random.PRNGKey(0)

    fwd = jax.jit(fc1_pub_bn_forward,
                  static_argnames=("ind", "mxu_dtype", "tile_n", "tiled"))

    def make_inputs(k, n, i, o):
        kx, kw, kb, kg0, kb0, kg1, kb1 = jax.random.split(k, 7)
        bound = 1.0 / (i ** 0.5)
        x = jax.random.normal(kx, (n, i), dtype=jnp.float32)
        weight = jax.random.uniform(kw, (o, i), minval=-bound, maxval=bound,
                                    dtype=jnp.float32)
        bias = jax.random.uniform(kb, (o,), minval=-bound, maxval=bound,
                                  dtype=jnp.float32)
        gamma0 = 1.0 + 0.1 * jax.random.normal(kg0, (o,), dtype=jnp.float32)
        beta0 = 0.1 * jax.random.normal(kb0, (o,), dtype=jnp.float32)
        gamma1 = 1.0 + 0.1 * jax.random.normal(kg1, (o,), dtype=jnp.float32)
        beta1 = 0.1 * jax.random.normal(kb1, (o,), dtype=jnp.float32)
        return x, weight, bias, gamma0, beta0, gamma1, beta1

    k1, k2, k3 = jax.random.split(key, 3)

    # --- small shapes (fused path), both BN branches ------------------------
    args = make_inputs(k1, 8, 16, 32)
    x, weight, bias, g0, b0, g1, b1 = args
    out0 = fwd(*args, ind=0)                                # bf16 MXU (default)
    out1 = fwd(*args, ind=1)
    out0_f32 = fwd(*args, ind=0, mxu_dtype=jnp.float32)     # exact-algorithm check
    jax.block_until_ready((out0, out1, out0_f32))
    ref0 = _reference(x, weight, bias, g0, b0)
    ref1 = _reference(x, weight, bias, g1, b1)
    assert out0.shape == ref0.shape
    assert jnp.allclose(out0_f32, ref0, atol=1e-4, rtol=1e-4)
    assert jnp.allclose(out0, ref0, atol=5e-2, rtol=5e-2)
    assert jnp.allclose(out1, ref1, atol=5e-2, rtol=5e-2)

    # --- batch not a multiple of 8 (masked-stats path in fused kernel) ------
    args6 = make_inputs(k2, 6, 16, 32)
    out6 = fwd(*args6, ind=0, mxu_dtype=jnp.float32)
    jax.block_until_ready(out6)
    ref6 = _reference(args6[0], args6[1], args6[2], args6[3], args6[4])
    assert jnp.allclose(out6, ref6, atol=1e-4, rtol=1e-4)

    # --- larger batch: tiled two-pass path (parallel batch tiles) -----------
    argsT = make_inputs(k3, 1100, 96, 200)
    outT_f32 = fwd(*argsT, ind=1, mxu_dtype=jnp.float32, tile_n=256, tiled=True)
    outT_b16 = fwd(*argsT, ind=1, tile_n=256, tiled=True)
    jax.block_until_ready((outT_f32, outT_b16))
    refT = _reference(argsT[0], argsT[1], argsT[2], argsT[5], argsT[6])
    assert jnp.allclose(outT_f32, refT, atol=1e-3, rtol=1e-3)
    # bf16 MXU operands + bf16 y intermediate -> looser tolerance.
    assert jnp.allclose(outT_b16, refT, atol=1e-1, rtol=5e-2)

    # --- auto-derived tile size / auto path selection -----------------------
    outA = fwd(*argsT, ind=0)
    jax.block_until_ready(outA)
    refA = _reference(argsT[0], argsT[1], argsT[2], argsT[3], argsT[4])
    assert jnp.allclose(outA, refA, atol=1e-1, rtol=5e-2)

    # TODO(synk): BatchNorm1d running_mean/running_var buffer updates (a
    # training-time side effect of the module) are not emitted.
    print("KERNEL_OK")
</pallas_src>

<mosaic_0001>
module attributes {stable_mosaic.version = 11 : i64} {
  func.func @_fused_kernel(%arg0: memref<8x16xf32, #tpu.memory_space<vmem>>, %arg1: memref<16x128xbf16, #tpu.memory_space<vmem>>, %arg2: memref<2x128xf32, #tpu.memory_space<vmem>>, %arg3: memref<8x128xf32, #tpu.memory_space<vmem>>) attributes {dimension_semantics = [], scalar_prefetch = 0 : i64, scratch_operands = 0 : i64, tpu.core_type = #tpu.core_type<tc>} {
    %c0 = arith.constant 0 : index
    %c0_0 = arith.constant 0 : index
    %0 = vector.load %arg0[%c0, %c0_0] : memref<8x16xf32, #tpu.memory_space<vmem>>, vector<8x16xf32>
    %1 = arith.truncf %0 : vector<8x16xf32> to vector<8x16xbf16>
    %c0_1 = arith.constant 0 : index
    %c0_2 = arith.constant 0 : index
    %2 = vector.load %arg1[%c0_1, %c0_2] : memref<16x128xbf16, #tpu.memory_space<vmem>>, vector<16x128xbf16>
    %cst = arith.constant dense<0.000000e+00> : vector<8x128xf32>
    %3 = tpu.matmul %1, %2, %cst {dimension_numbers = #tpu.dot_dimension_numbers<[1], [0], [0], [1], [0, 0, 1, 1], [], []>} : vector<8x16xbf16>, vector<16x128xbf16>, vector<8x128xf32> -> vector<8x128xf32>
    %cst_3 = arith.constant dense<0.000000e+00> : vector<128xf32>
    %4 = vector.multi_reduction <add>, %3, %cst_3 [0] : vector<8x128xf32> to vector<128xf32>
    %5 = vector.shape_cast %4 : vector<128xf32> to vector<1x128xf32>
    %cst_4 = arith.constant 1.250000e-01 : f32
    %6 = vector.broadcast %cst_4 : f32 to vector<1x128xf32>
    %7 = arith.mulf %5, %6 : vector<1x128xf32>
    %8 = vector.broadcast %7 : vector<1x128xf32> to vector<8x128xf32>
    %9 = arith.subf %3, %8 : vector<8x128xf32>
    %10 = arith.mulf %9, %9 : vector<8x128xf32>
    %cst_5 = arith.constant dense<0.000000e+00> : vector<128xf32>
    %11 = vector.multi_reduction <add>, %10, %cst_5 [0] : vector<8x128xf32> to vector<128xf32>
    %12 = vector.shape_cast %11 : vector<128xf32> to vector<1x128xf32>
    %cst_6 = arith.constant 1.250000e-01 : f32
    %13 = vector.broadcast %cst_6 : f32 to vector<1x128xf32>
    %14 = arith.mulf %12, %13 : vector<1x128xf32>
    %cst_7 = arith.constant 9.99999974E-6 : f32
    %15 = vector.broadcast %cst_7 : f32 to vector<1x128xf32>
    %16 = arith.addf %14, %15 : vector<1x128xf32>
    %17 = math.rsqrt %16 : vector<1x128xf32>
    %c0_8 = arith.constant 0 : index
    %c0_9 = arith.constant 0 : index
    %18 = vector.load %arg2[%c0_8, %c0_9] : memref<2x128xf32, #tpu.memory_space<vmem>>, vector<1x128xf32>
    %19 = arith.mulf %18, %17 : vector<1x128xf32>
    %c1 = arith.constant 1 : index
    %c0_10 = arith.constant 0 : index
    %20 = vector.load %arg2[%c1, %c0_10] : memref<2x128xf32, #tpu.memory_space<vmem>>, vector<1x128xf32>
    %21 = arith.mulf %7, %19 : vector<1x128xf32>
    %22 = arith.subf %20, %21 : vector<1x128xf32>
    %23 = vector.broadcast %19 : vector<1x128xf32> to vector<8x128xf32>
    %24 = arith.mulf %3, %23 : vector<8x128xf32>
    %25 = vector.broadcast %22 : vector<1x128xf32> to vector<8x128xf32>
    %26 = arith.addf %24, %25 : vector<8x128xf32>
    %c0_11 = arith.constant 0 : index
    %c0_12 = arith.constant 0 : index
    %27 = vector.load %arg3[%c0_11, %c0_12] : memref<8x128xf32, #tpu.memory_space<vmem>>, vector<8x128xf32>
    tpu.vector_store %arg3[%c0_11, %c0_12], %26 {strides = array<i32>} : memref<8x128xf32, #tpu.memory_space<vmem>>, vector<8x128xf32>,
    return
  }
}

</mosaic_0001>

<bundles_post_ra>
// kernel: fc1_pub_bn_forward.1
= control target key start
LH: loop header
LB: loop body
LE: loop exit
PB: predicated region body
PF: predicated region fallthrough
CT: control target
= control target key end

     0   :  { %v156_v1 = vmov 0.0   ;;  %s194_s0 = inlined_call_operand.vmem [shape: f32[8,16], index: 0, kind: input, shape index: {}]   ;;  %s195_s1 = inlined_call_operand.vmem [shape: bf16[16,128], index: 1, kind: input, shape index: {}]   ;;  %s196_s2 = inlined_call_operand.vmem [shape: f32[2,128], index: 2, kind: input, shape index: {}]   ;;  %s197_s3 = inlined_call_operand.hbm [shape: f32[8,128], index: 3, kind: output, shape index: {}]  }
   0x1   :  { %v131_v0 = vld [vmem:[%s195_s1] sm:$0xff]   ;;  %122 = vmatprep.subr.bf16.mxu0 %v156_v1 }
   0x2   :  { %v16_v2 = vld [vmem:[%s194_s0] sm:$0xff] }
   0x3   :  { %8 = vsyncpa [#allocation3], 0  ;;  %123 = vmatpush3.bf16.msra.mxu0 %v131_v0  ;;  %vm157_vm0 = vmmov 0   ;;  %v17_v3 = vpack.c.bf16 %v16_v2, %v16_v2  ;;  %vm26_vm1 = vcmask 130048   ;;  %v93_v25 = vlaneseq  ;;  %v88_v27 = vld [vmem:[%s196_s2] sm:$0x1] }
   0x4   :  { %124 = vmatprep.mubr.msk.bf16.mxu0 %vm157_vm0, %v156_v1  ;;  %v90_v31 = vld [vmem:[%s196_s2 + $0x1] sm:$0x1]  ;;  %s158_s18 = smov [#allocation2]  }
   0x5   :  { %v94_v26 = vshrl.u32 %v93_v25, 7  ;;  %s110_s19 = sshll.u32 %s158_s18, 4  ;;  %s111_s19 = int_to_ptr.vmem [resolvable:$true] %s110_s19 }
   0x6   :  { %125 = vmatmul.mubr.msk.bf16.vlgmr.msra.gmra.mxu0 %vm26_vm1, %v17_v3  ;;  %s134_s20 = scalar_lea.vmem %s111_s19, 128  ;;  %p139_p1 = scmp.lt.s32.totalorder %s111_s19, %s111_s19 }
   0x7   :  { %v95_v28 = vsub.s32 0, %v94_v26  ;;  %p135_p0 = scmp.ne.s32.totalorder %s111_s19, %s134_s20  ;;  %p140_p2 = scmp.lt.s32.totalorder %s134_s20, %s134_s20 }
   0x9   :  { %p141_p3 = por %p140_p2, %p139_p1 }
   0xb   :  { %p142_p4 = pnand %p141_p3, %p135_p0 }
  0xc6   :  { %v64_v4 = vpop.f32.mrf.mxu0 }
  0xc7   :  { %v70_v5 = vrot.slane %v64_v4, 4 }
  0xc8   :  { %v126_v6 = vpop.f32.mrf.mxu0 }
  0xc9   :  { %v71_v7 = vadd.f32 %v70_v5, %v64_v4 }
  0xca   :  { %v67_v8 = vpop.f32.mrf.mxu0 }
  0xcb   :  { %v72_v9 = vrot.slane %v71_v7, 2 }
  0xcc   :  { %v127_v10 = vpop.f32.mrf.mxu0 }
  0xcd   :  { %v73_v11 = vadd.f32 %v72_v9, %v71_v7 }
  0xcf   :  { %v74_v12 = vrot.slane %v73_v11, 1 }
  0xd1   :  { %v75_v13 = vadd.f32 %v74_v12, %v73_v11 }
  0xd3   :  { %v76_v14 = vmul.f32 0.125, %v75_v13 }
  0xd5   :  { %v77_v15 = vsub.f32 %v64_v4, %v76_v14 }
  0xd7   :  { %v78_v16 = vmul.f32 %v77_v15, %v77_v15 }
  0xd9   :  { %v79_v17 = vrot.slane %v78_v16, 4 }
  0xdb   :  { %v80_v18 = vadd.f32 %v79_v17, %v78_v16 }
  0xdd   :  { %v81_v19 = vrot.slane %v80_v18, 2 }
  0xdf   :  { %v82_v20 = vadd.f32 %v81_v19, %v80_v18 }
  0xe1   :  { %v83_v21 = vrot.slane %v82_v20, 1 }
  0xe3   :  { %v84_v22 = vadd.f32 %v83_v21, %v82_v20 }
  0xe5   :  { %v85_v23 = vmul.f32 0.125, %v84_v22 }
  0xe7   :  { %v86_v24 = vadd.f32 1e-05, %v85_v23 }
  0xe9   :  { %132 = vrsqrt.f32 %v86_v24 }
  0xf6   :  { %v133_v29 = vpop.eup %132 }
  0xf7   :  { %v89_v30 = vmul.f32 %v133_v29, %v88_v27 }
  0xf9   :  { %v91_v32 = vmul.f32 %v89_v30, %v76_v14  ;;  %v96_v33 = vrot.slane %v89_v30, %v95_v28 }
  0xfb   :  { %v92_v34 = vsub.f32 %v90_v31, %v91_v32  ;;  %v97_v35 = vmul.f32 %v96_v33, %v64_v4 }
  0xfd   :  { %v101_v36 = vrot.slane %v92_v34, %v95_v28 }
  0xff   :  { %v102_v37 = vadd.f32 %v101_v36, %v97_v35 }
 0x101   :  { %103 = vst [vmem:[#allocation2] sm:$0xff] %v102_v37 }
 0x102   :  { %145 = shalt.err (!%p142_p4)
}
 0x103   :  { %113 = dma.vmem_to_hbm [thread:$0]  %s111_s19, 128, %s197_s3, [#allocation3]  }
 0x104   :  { %154 = dma.done.wait [#allocation3], 128  }
 0x105   :  { %155 = vsyncadd [#allocation3], 4294967168 }
 0x106   :  { %117 = vsyncpa [#allocation3], 1 }

</bundles_post_ra>
